<compile_context>
chip_gen: v5e
topology: v5e:2x2
jax: 0.10.0
libtpu: 0.0.40
codegen_flags: <defaults>
</compile_context>

<pallas_src>
import jax
import jax.numpy as jnp
from jax.experimental import pallas as pl
from jax.experimental.pallas import tpu as pltpu

# ---- synthetic HashingMemory config -----------------------------------------
INPUT_DIM = 32          # input_dim of SkipHashingMemory
COMPRESSED_DIM = 32     # v_dim of memory values == reproj input dim
K_DIM = 16              # product-key query dim (two halves)
HALF = K_DIM // 2       # 8
N_KEYS = 16             # sub-keys per half -> N_KEYS**2 = 256 memory slots
N_SLOTS = N_KEYS * N_KEYS
HALF_SLOTS = N_SLOTS // 2   # 128 -> lane-aligned split point
KNN = 4                 # number of memory slots selected per query
NEG_INF = -1e30


def _round8(n):
    return ((n + 7) // 8) * 8


# ---- Pallas kernel -----------------------------------------------------------
def skip_hashing_memory_kernel(x_ref, wk_ref, bk_ref, vr_ref, br_ref, o_ref):
    x = x_ref[...].astype(jnp.float32)                                 # (TB, 32)

    # Product-key scores over all N_KEYS**2 slots in one MXU pass
    # (query projection is pre-folded into wk / bk).
    s = jnp.dot(x, wk_ref[...], preferred_element_type=jnp.float32) + bk_ref[...]  # (TB, 256)

    # Lane-aligned 128-wide halves (static slices on a 128-lane boundary: no
    # relayout).  All cross-lane reduces below are 128-lane, with the other
    # half folded in by a cheap VPU maximum.
    s_a = s[:, :HALF_SLOTS]                                            # (TB, 128)
    s_b = s[:, HALF_SLOTS:]                                            # (TB, 128)

    # Exact top-KNN selection: KNN-1 unrolled max+mask passes give the KNN-th
    # largest score per row; threshold against it.  The first (global) row max
    # is reused as the softmax max (it is always in the top-K), and the softmax
    # denominator is accumulated from the thresholds themselves — all
    # (TB, 1)-wide ops, so no full-width cross-lane sum is needed.
    row_max = jnp.max(jnp.maximum(s_a, s_b), axis=-1, keepdims=True)   # (TB, 1)
    cur_a, cur_b = s_a, s_b
    thr = row_max
    denom = jnp.ones_like(row_max)
    for _ in range(KNN - 1):
        cur_a = jnp.where(cur_a >= thr, NEG_INF, cur_a)
        cur_b = jnp.where(cur_b >= thr, NEG_INF, cur_b)
        thr = jnp.max(jnp.maximum(cur_a, cur_b), axis=-1, keepdims=True)
        denom = denom + jnp.exp(thr - row_max)

    inv_denom = pl.reciprocal(denom)                                   # exact, (TB, 1)

    # Softmax weights over the selected scores only (EUP exp, recip-multiply).
    w_a = jnp.where(s_a >= thr, jnp.exp(s_a - row_max), 0.0) * inv_denom
    w_b = jnp.where(s_b >= thr, jnp.exp(s_b - row_max), 0.0) * inv_denom

    # Weighted sum of (reproj-folded) value rows + bias + residual skip.
    # vr is consumed as two static 128-row halves matching w_a / w_b.
    y = (jnp.dot(w_a, vr_ref[:HALF_SLOTS, :], preferred_element_type=jnp.float32)
         + jnp.dot(w_b, vr_ref[HALF_SLOTS:, :], preferred_element_type=jnp.float32)
         + br_ref[...])
    o_ref[...] = (x + y).astype(o_ref.dtype)


# ---- wrapper -----------------------------------------------------------------
def skip_hashing_memory(x, params, tile_rows=1024):
    # NOTE: keep tile_rows in [1024, 2048]; larger tiles materialize several
    # (tile, 256) f32 temporaries and can exceed the default scoped VMEM limit
    # (set pltpu.CompilerParams(vmem_limit_bytes=...) explicitly if you must).
    B, T, D = x.shape
    assert D == INPUT_DIM
    xf = x.reshape(B * T, D)            # native dtype; cast happens in-kernel
    n_rows = xf.shape[0]

    wk, bk, vr, br = params["wk"], params["bk"], params["vr"], params["br"]

    # Effective tile: multiple of 8, no larger than the (rounded-up) row count,
    # and capped at ~half the rows so the grid has >= 2 steps whenever possible
    # (v7x has 2 TensorCores; a length-1 "parallel" grid leaves one idle).
    rows_8 = _round8(n_rows)
    tile_8 = _round8(max(tile_rows, 1))
    half_cap = _round8(pl.cdiv(rows_8, 2))
    tile = max(8, min(tile_8, rows_8, half_cap))
    n_pad = pl.cdiv(n_rows, tile) * tile
    if n_pad != n_rows:
        xf = jnp.pad(xf, ((0, n_pad - n_rows), (0, 0)))
    grid = (n_pad // tile,)

    def full_spec(a):
        nd = a.ndim
        return pl.BlockSpec(a.shape, lambda i, _nd=nd: (0,) * _nd)

    flops = 2 * n_pad * D * N_SLOTS + 2 * n_pad * N_SLOTS * D
    transcendentals = n_pad * N_SLOTS  # exp per score (upper bound)
    bytes_accessed = 4 * (2 * n_pad * D + wk.size + bk.size + vr.size + br.size)

    out = pl.pallas_call(
        skip_hashing_memory_kernel,
        out_shape=jax.ShapeDtypeStruct((n_pad, D), xf.dtype),
        grid=grid,
        in_specs=[pl.BlockSpec((tile, D), lambda i: (i, 0)),
                  full_spec(wk), full_spec(bk), full_spec(vr), full_spec(br)],
        out_specs=pl.BlockSpec((tile, D), lambda i: (i, 0)),
        compiler_params=pltpu.CompilerParams(
            dimension_semantics=("parallel",)),
        cost_estimate=pl.CostEstimate(flops=flops,
                                      transcendentals=transcendentals,
                                      bytes_accessed=bytes_accessed),
    )(xf, wk, bk, vr, br)
    return out[:n_rows].reshape(B, T, D)


# ---- deterministic parameter init --------------------------------------------
def init_params(key):
    ks = jax.random.split(key, 8)
    wq1 = jax.random.normal(ks[0], (INPUT_DIM, HALF), jnp.float32) / jnp.sqrt(INPUT_DIM)
    wq2 = jax.random.normal(ks[1], (INPUT_DIM, HALF), jnp.float32) / jnp.sqrt(INPUT_DIM)
    bq1 = 0.01 * jax.random.normal(ks[2], (1, HALF), jnp.float32)
    bq2 = 0.01 * jax.random.normal(ks[3], (1, HALF), jnp.float32)
    k1 = jax.random.normal(ks[4], (N_KEYS, HALF), jnp.float32) / jnp.sqrt(HALF)
    k2 = jax.random.normal(ks[5], (N_KEYS, HALF), jnp.float32) / jnp.sqrt(HALF)
    vals = jax.random.normal(ks[6], (N_SLOTS, COMPRESSED_DIM), jnp.float32)
    wr = jax.random.normal(ks[7], (COMPRESSED_DIM, INPUT_DIM), jnp.float32) / jnp.sqrt(COMPRESSED_DIM)
    br = jnp.zeros((1, INPUT_DIM), jnp.float32)

    # Expanded product keys: col (i*N_KEYS + j) -> K1[i] resp. K2[j], so the
    # full score map equals s1[:, :, None] + s2[:, None, :] flattened.
    k1e = jnp.repeat(k1.T, N_KEYS, axis=1)     # (HALF, 256)
    k2e = jnp.tile(k2.T, (1, N_KEYS))          # (HALF, 256)

    # Offline algebraic folds (kernel then does exactly two matmuls):
    wk = wq1 @ k1e + wq2 @ k2e                 # (32, 256)
    bk = bq1 @ k1e + bq2 @ k2e                 # (1, 256)
    vr = vals @ wr                             # (256, 32)

    return dict(wq1=wq1, bq1=bq1, wq2=wq2, bq2=bq2, k1=k1, k2=k2,
                vals=vals, wr=wr, br=br, wk=wk, bk=bk, vr=vr)


# ---- pure-JAX reference (mirrors the PyTorch forward, unfused) ----------------
def reference(x, p):
    B, T, D = x.shape
    xf = x.reshape(-1, D)
    q1 = xf @ p["wq1"] + p["bq1"][0]
    q2 = xf @ p["wq2"] + p["bq2"][0]
    s1 = q1 @ p["k1"].T                                  # (N, N_KEYS)
    s2 = q2 @ p["k2"].T
    s = (s1[:, :, None] + s2[:, None, :]).reshape(-1, N_SLOTS)
    top_s, top_i = jax.lax.top_k(s, KNN)
    w = jax.nn.softmax(top_s, axis=-1)
    mem = jnp.einsum("nk,nkv->nv", w, p["vals"][top_i])
    y = xf + mem @ p["wr"] + p["br"][0]
    return y.reshape(B, T, D)


if __name__ == "__main__":
    key = jax.random.PRNGKey(0)
    kx, kx2, kp = jax.random.split(key, 3)
    params = init_params(kp)

    # x: (batch=2, time=8, input_dim=32) -> flattened to (16, 32) inside forward
    x = jax.random.normal(kx, (2, 8, INPUT_DIM), jnp.float32)
    out = jax.block_until_ready(skip_hashing_memory(x, params))
    ref = jax.block_until_ready(reference(x, params))
    assert out.shape == (2, 8, INPUT_DIM)
    assert jnp.allclose(out, ref, rtol=1e-4, atol=1e-4), (
        float(jnp.max(jnp.abs(out - ref))))

    # Second check: non-multiple-of-tile row count exercises the padding path.
    x2 = jax.random.normal(kx2, (3, 5, INPUT_DIM), jnp.float32)   # 15 rows
    out2 = jax.block_until_ready(skip_hashing_memory(x2, params))
    ref2 = jax.block_until_ready(reference(x2, params))
    assert out2.shape == (3, 5, INPUT_DIM)
    assert jnp.allclose(out2, ref2, rtol=1e-4, atol=1e-4), (
        float(jnp.max(jnp.abs(out2 - ref2))))

    print("KERNEL_OK")
</pallas_src>

<mosaic_0001>
module attributes {stable_mosaic.version = 11 : i64} {
  func.func @skip_hashing_memory_kernel(%arg0: i32, %arg1: memref<8x32xf32, #tpu.memory_space<vmem>>, %arg2: memref<32x256xf32, #tpu.memory_space<vmem>>, %arg3: memref<1x256xf32, #tpu.memory_space<vmem>>, %arg4: memref<256x32xf32, #tpu.memory_space<vmem>>, %arg5: memref<1x32xf32, #tpu.memory_space<vmem>>, %arg6: memref<8x32xf32, #tpu.memory_space<vmem>>) attributes {dimension_semantics = [#tpu.dimension_semantics<parallel>], iteration_bounds = array<i64: 2>, scalar_prefetch = 0 : i64, scratch_operands = 0 : i64, tpu.core_type = #tpu.core_type<tc>, window_params = [{transform_indices = @transform_0, window_bounds = array<i64: 8, 32>}, {pipeline_mode = #tpu.pipeline_mode<synchronous>, transform_indices = @transform_1, window_bounds = array<i64: 32, 256>}, {pipeline_mode = #tpu.pipeline_mode<synchronous>, transform_indices = @transform_2, window_bounds = array<i64: 1, 256>}, {pipeline_mode = #tpu.pipeline_mode<synchronous>, transform_indices = @transform_3, window_bounds = array<i64: 256, 32>}, {pipeline_mode = #tpu.pipeline_mode<synchronous>, transform_indices = @transform_4, window_bounds = array<i64: 1, 32>}, {transform_indices = @transform_5, window_bounds = array<i64: 8, 32>}]} {
    %c0 = arith.constant 0 : index
    %c0_0 = arith.constant 0 : index
    %0 = vector.load %arg1[%c0, %c0_0] : memref<8x32xf32, #tpu.memory_space<vmem>>, vector<8x32xf32>
    %c0_1 = arith.constant 0 : index
    %c0_2 = arith.constant 0 : index
    %1 = vector.load %arg2[%c0_1, %c0_2] : memref<32x256xf32, #tpu.memory_space<vmem>>, vector<32x256xf32>
    %cst = arith.constant dense<0.000000e+00> : vector<8x256xf32>
    %2 = tpu.matmul %0, %1, %cst {dimension_numbers = #tpu.dot_dimension_numbers<[1], [0], [0], [1], [0, 0, 1, 1], [], []>} : vector<8x32xf32>, vector<32x256xf32>, vector<8x256xf32> -> vector<8x256xf32>
    %c0_3 = arith.constant 0 : index
    %c0_4 = arith.constant 0 : index
    %3 = vector.load %arg3[%c0_3, %c0_4] : memref<1x256xf32, #tpu.memory_space<vmem>>, vector<1x256xf32>
    %4 = vector.broadcast %3 : vector<1x256xf32> to vector<8x256xf32>
    %5 = arith.addf %2, %4 : vector<8x256xf32>
    %6 = vector.extract_strided_slice %5 {offsets = [0, 0], sizes = [8, 128], strides = [1, 1]} : vector<8x256xf32> to vector<8x128xf32>
    %7 = vector.extract_strided_slice %5 {offsets = [0, 128], sizes = [8, 128], strides = [1, 1]} : vector<8x256xf32> to vector<8x128xf32>
    %8 = arith.maximumf %6, %7 : vector<8x128xf32>
    %cst_5 = arith.constant dense<0xFF800000> : vector<8xf32>
    %9 = vector.multi_reduction <maximumf>, %8, %cst_5 [1] : vector<8x128xf32> to vector<8xf32>
    %10 = vector.shape_cast %9 : vector<8xf32> to vector<8x1xf32>
    %cst_6 = arith.constant 1.000000e+00 : f32
    %11 = vector.broadcast %cst_6 : f32 to vector<8x1xf32>
    %12 = vector.broadcast %10 : vector<8x1xf32> to vector<8x128xf32>
    %13 = arith.cmpf oge, %6, %12 : vector<8x128xf32>
    %cst_7 = arith.constant -1.000000e+30 : f32
    %14 = vector.broadcast %cst_7 : f32 to vector<8x128xf32>
    %15 = arith.select %13, %14, %6 : vector<8x128xi1>, vector<8x128xf32>
    %16 = vector.broadcast %10 : vector<8x1xf32> to vector<8x128xf32>
    %17 = arith.cmpf oge, %7, %16 : vector<8x128xf32>
    %cst_8 = arith.constant -1.000000e+30 : f32
    %18 = vector.broadcast %cst_8 : f32 to vector<8x128xf32>
    %19 = arith.select %17, %18, %7 : vector<8x128xi1>, vector<8x128xf32>
    %20 = arith.maximumf %15, %19 : vector<8x128xf32>
    %cst_9 = arith.constant dense<0xFF800000> : vector<8xf32>
    %21 = vector.multi_reduction <maximumf>, %20, %cst_9 [1] : vector<8x128xf32> to vector<8xf32>
    %22 = vector.shape_cast %21 : vector<8xf32> to vector<8x1xf32>
    %23 = arith.subf %22, %10 : vector<8x1xf32>
    %24 = math.exp %23 : vector<8x1xf32>
    %25 = arith.addf %11, %24 : vector<8x1xf32>
    %26 = vector.broadcast %22 : vector<8x1xf32> to vector<8x128xf32>
    %27 = arith.cmpf oge, %15, %26 : vector<8x128xf32>
    %cst_10 = arith.constant -1.000000e+30 : f32
    %28 = vector.broadcast %cst_10 : f32 to vector<8x128xf32>
    %29 = arith.select %27, %28, %15 : vector<8x128xi1>, vector<8x128xf32>
    %30 = vector.broadcast %22 : vector<8x1xf32> to vector<8x128xf32>
    %31 = arith.cmpf oge, %19, %30 : vector<8x128xf32>
    %cst_11 = arith.constant -1.000000e+30 : f32
    %32 = vector.broadcast %cst_11 : f32 to vector<8x128xf32>
    %33 = arith.select %31, %32, %19 : vector<8x128xi1>, vector<8x128xf32>
    %34 = arith.maximumf %29, %33 : vector<8x128xf32>
    %cst_12 = arith.constant dense<0xFF800000> : vector<8xf32>
    %35 = vector.multi_reduction <maximumf>, %34, %cst_12 [1] : vector<8x128xf32> to vector<8xf32>
    %36 = vector.shape_cast %35 : vector<8xf32> to vector<8x1xf32>
    %37 = arith.subf %36, %10 : vector<8x1xf32>
    %38 = math.exp %37 : vector<8x1xf32>
    %39 = arith.addf %25, %38 : vector<8x1xf32>
    %40 = vector.broadcast %36 : vector<8x1xf32> to vector<8x128xf32>
    %41 = arith.cmpf oge, %29, %40 : vector<8x128xf32>
    %cst_13 = arith.constant -1.000000e+30 : f32
    %42 = vector.broadcast %cst_13 : f32 to vector<8x128xf32>
    %43 = arith.select %41, %42, %29 : vector<8x128xi1>, vector<8x128xf32>
    %44 = vector.broadcast %36 : vector<8x1xf32> to vector<8x128xf32>
    %45 = arith.cmpf oge, %33, %44 : vector<8x128xf32>
    %cst_14 = arith.constant -1.000000e+30 : f32
    %46 = vector.broadcast %cst_14 : f32 to vector<8x128xf32>
    %47 = arith.select %45, %46, %33 : vector<8x128xi1>, vector<8x128xf32>
    %48 = arith.maximumf %43, %47 : vector<8x128xf32>
    %cst_15 = arith.constant dense<0xFF800000> : vector<8xf32>
    %49 = vector.multi_reduction <maximumf>, %48, %cst_15 [1] : vector<8x128xf32> to vector<8xf32>
    %50 = vector.shape_cast %49 : vector<8xf32> to vector<8x1xf32>
    %51 = arith.subf %50, %10 : vector<8x1xf32>
    %52 = math.exp %51 : vector<8x1xf32>
    %53 = arith.addf %39, %52 : vector<8x1xf32>
    %54 = tpu.reciprocal %53 : vector<8x1xf32> -> vector<8x1xf32>
    %55 = vector.broadcast %50 : vector<8x1xf32> to vector<8x128xf32>
    %56 = arith.cmpf oge, %6, %55 : vector<8x128xf32>
    %57 = vector.broadcast %10 : vector<8x1xf32> to vector<8x128xf32>
    %58 = arith.subf %6, %57 : vector<8x128xf32>
    %59 = math.exp %58 : vector<8x128xf32>
    %cst_16 = arith.constant 0.000000e+00 : f32
    %60 = vector.broadcast %cst_16 : f32 to vector<8x128xf32>
    %61 = arith.select %56, %59, %60 : vector<8x128xi1>, vector<8x128xf32>
    %62 = vector.broadcast %54 : vector<8x1xf32> to vector<8x128xf32>
    %63 = arith.mulf %61, %62 : vector<8x128xf32>
    %64 = vector.broadcast %50 : vector<8x1xf32> to vector<8x128xf32>
    %65 = arith.cmpf oge, %7, %64 : vector<8x128xf32>
    %66 = vector.broadcast %10 : vector<8x1xf32> to vector<8x128xf32>
    %67 = arith.subf %7, %66 : vector<8x128xf32>
    %68 = math.exp %67 : vector<8x128xf32>
    %cst_17 = arith.constant 0.000000e+00 : f32
    %69 = vector.broadcast %cst_17 : f32 to vector<8x128xf32>
    %70 = arith.select %65, %68, %69 : vector<8x128xi1>, vector<8x128xf32>
    %71 = vector.broadcast %54 : vector<8x1xf32> to vector<8x128xf32>
    %72 = arith.mulf %70, %71 : vector<8x128xf32>
    %c0_18 = arith.constant 0 : index
    %c0_19 = arith.constant 0 : index
    %73 = vector.load %arg4[%c0_18, %c0_19] : memref<256x32xf32, #tpu.memory_space<vmem>>, vector<128x32xf32>
    %cst_20 = arith.constant dense<0.000000e+00> : vector<8x32xf32>
    %74 = tpu.matmul %63, %73, %cst_20 {dimension_numbers = #tpu.dot_dimension_numbers<[1], [0], [0], [1], [0, 0, 1, 1], [], []>} : vector<8x128xf32>, vector<128x32xf32>, vector<8x32xf32> -> vector<8x32xf32>
    %c128 = arith.constant 128 : index
    %c0_21 = arith.constant 0 : index
    %75 = vector.load %arg4[%c128, %c0_21] : memref<256x32xf32, #tpu.memory_space<vmem>>, vector<128x32xf32>
    %cst_22 = arith.constant dense<0.000000e+00> : vector<8x32xf32>
    %76 = tpu.matmul %72, %75, %cst_22 {dimension_numbers = #tpu.dot_dimension_numbers<[1], [0], [0], [1], [0, 0, 1, 1], [], []>} : vector<8x128xf32>, vector<128x32xf32>, vector<8x32xf32> -> vector<8x32xf32>
    %77 = arith.addf %74, %76 : vector<8x32xf32>
    %c0_23 = arith.constant 0 : index
    %c0_24 = arith.constant 0 : index
    %78 = vector.load %arg5[%c0_23, %c0_24] : memref<1x32xf32, #tpu.memory_space<vmem>>, vector<1x32xf32>
    %79 = vector.broadcast %78 : vector<1x32xf32> to vector<8x32xf32>
    %80 = arith.addf %77, %79 : vector<8x32xf32>
    %81 = arith.addf %0, %80 : vector<8x32xf32>
    %c0_25 = arith.constant 0 : index
    %c0_26 = arith.constant 0 : index
    %82 = vector.load %arg6[%c0_25, %c0_26] : memref<8x32xf32, #tpu.memory_space<vmem>>, vector<8x32xf32>
    tpu.vector_store %arg6[%c0_25, %c0_26], %81 {strides = array<i32>} : memref<8x32xf32, #tpu.memory_space<vmem>>, vector<8x32xf32>,
    return
  }
  func.func @transform_0(%arg0: i32) -> (i32, i32) {
    %c0_i32 = arith.constant 0 : i32
    %c0_i32_0 = arith.constant 0 : i32
    return %arg0, %c0_i32 : i32, i32
  }
  func.func @transform_1(%arg0: i32) -> (i32, i32) {
    %c0_i32 = arith.constant 0 : i32
    %c0_i32_0 = arith.constant 0 : i32
    %c0_i32_1 = arith.constant 0 : i32
    return %c0_i32, %c0_i32_0 : i32, i32
  }
  func.func @transform_2(%arg0: i32) -> (i32, i32) {
    %c0_i32 = arith.constant 0 : i32
    %c0_i32_0 = arith.constant 0 : i32
    %c0_i32_1 = arith.constant 0 : i32
    return %c0_i32, %c0_i32_0 : i32, i32
  }
  func.func @transform_3(%arg0: i32) -> (i32, i32) {
    %c0_i32 = arith.constant 0 : i32
    %c0_i32_0 = arith.constant 0 : i32
    %c0_i32_1 = arith.constant 0 : i32
    return %c0_i32, %c0_i32_0 : i32, i32
  }
  func.func @transform_4(%arg0: i32) -> (i32, i32) {
    %c0_i32 = arith.constant 0 : i32
    %c0_i32_0 = arith.constant 0 : i32
    %c0_i32_1 = arith.constant 0 : i32
    return %c0_i32, %c0_i32_0 : i32, i32
  }
  func.func @transform_5(%arg0: i32) -> (i32, i32) {
    %c0_i32 = arith.constant 0 : i32
    %c0_i32_0 = arith.constant 0 : i32
    return %arg0, %c0_i32 : i32, i32
  }
}

</mosaic_0001>

<bundles_post_ra>
// kernel: tpu_custom_call.1
= control target key start
LH: loop header
LB: loop body
LE: loop exit
PB: predicated region body
PF: predicated region fallthrough
CT: control target
= control target key end

     0   :  { %10 = vsyncpa [#allocation3], 0  ;;  %s905_s0 = inlined_call_operand.vmem [shape: f32[16,32], index: 0, kind: input, shape index: {}]   ;;  %s906_s1 = inlined_call_operand.vmem [shape: f32[32,256], index: 1, kind: input, shape index: {}]   ;;  %s907_s2 = inlined_call_operand.vmem [shape: f32[1,256], index: 2, kind: input, shape index: {}]   ;;  %s908_s3 = inlined_call_operand.vmem [shape: f32[256,32], index: 3, kind: input, shape index: {}]   ;;  %s909_s4 = inlined_call_operand.vmem [shape: f32[1,32], index: 4, kind: input, shape index: {}]   ;;  %s910_s5 = inlined_call_operand.hbm [shape: f32[16,32], index: 5, kind: output, shape index: {}]  }
   0x1   :  { %12 = vsyncpa [#allocation3 + $0x1], 0  ;;  %s653_s18 = smov 0   ;;  %s655_s19 = smov 0  }
   0x2   :  { %s657_s20 = smov 0   ;;  %s659_s21 = smov 0  }
   0x3 LB: > { %s674_s22 = sadd.s32 4294967295, %s621_s21   ;;  %s495_s23 = sadd.s32 4294967294, %s621_s21   ;;  %s621_s21 = sphi %s659_s21, %s916_s21   ;;  %s617_s20 = sphi %s657_s20, %s915_s20   ;;  %s613_s19 = sphi %s655_s19, %s914_s19   ;;  %s609_s18 = sphi %s653_s18, %s913_s18  }
   0x4   : > { %s678_s24 = sadd.s32 1, %s621_s21   ;;  %s135_s25 = sadd.s32 1, %s617_s20 }
   0x5   : > { %s132_s26 = ssub.s32 %s621_s21, %s678_s24  ;;  %p145_p0 = scmp.ne.s32.totalorder %s617_s20, %s613_s19 }
   0x6   : > { %p133_p1 = scmp.eq.s32.totalorder %s132_s26, 0  ;;  %p146_p2 = scmp.eq.s32.totalorder %s674_s22, 1 }
   0x7   : > { %p151_p3 = scmp.ne.s32.totalorder %s613_s19, %s609_s18  ;;  %p152_p4 = scmp.eq.s32.totalorder %s495_s23, 1 }
   0x8   : > { %s689_s27 = scalar_select %p133_p1, %s617_s20, %s135_s25  }
   0x9   : > { %p691_p5 = por %p146_p2, %p145_p0  ;;  %p695_p6 = por %p152_p4, %p151_p3 }
   0xa   : > { %p498_p7 = scmp.ge.s32.totalorder %s621_s21, 1  ;;  %p189_p8 = scmp.lt.s32.totalorder %s621_s21, 3 }
   0xc   : > { %p190_p9 = pnand %p498_p7, %p189_p8 }
   0xd   : > { %p216_p10 = scmp.lt.s32.totalorder (!%p190_p9), %s674_s22, 1  ;;  %s213_s12 = sand.u32 (!%p190_p9), 1, %s613_s19  }
   0xe   : > { %193 = sbr.rel (%p190_p9) target bundleno = 806 (0x326), region = 40  ;;  %s499_s13 = sshll.u32 (!%p190_p9), %s213_s12, 3 }
   0xf   : > { %s504_s14 = sshll.u32 (!%p190_p9), %s674_s22, 3  ;;  %s215_s26 = scalar_lea.vmem (!%p190_p9), [#allocation2], %s499_s13 }
  0x10   : > { %s431_s25 = scalar_lea.hbm (!%p190_p9), %s910_s5, %s504_s14  ;;  %s433_s30 = sshll.u32 (!%p190_p9), %s215_s26, 4  ;;  %s434_s30 = int_to_ptr.vmem [resolvable:$true] %s433_s30 }
  0x11   : > { %s579_s11 = scalar_lea.hbm (!%p190_p9), %s910_s5, 16 }
  0x13   : > { %v227_v0 = vld [vmem:[%s906_s1 + $0x30] sm:$0xff]  ;;  %v228_v1 = vld [vmem:[%s906_s1 + $0x38] sm:$0xff]  ;;  %v225_v2 = vld [vmem:[%s906_s1 + $0x20] sm:$0xff]  ;;  %s217_s17 = scalar_select %p216_p10, %s674_s22, 1  ;;  %vm235_vm0 = vcmask 261120  }
  0x14   : > { %251 = vmatpush.msra.mxu0 %v227_v0  ;;  %271 = vmatpush.msra.mxu1 %v228_v1  ;;  %v226_v3 = vld [vmem:[%s906_s1 + $0x28] sm:$0xff]  ;;  %v223_v4 = vld [vmem:[%s906_s1 + $0x10] sm:$0xff]  ;;  %v224_v5 = vld [vmem:[%s906_s1 + $0x18] sm:$0xff]  ;;  %s421_s22 = scalar_lea.sflag [#allocation3], %s213_s12 }
  0x15   : > { %v221_v6 = vld [vmem:[%s906_s1] sm:$0xff]  ;;  %v222_v7 = vld [vmem:[%s906_s1 + $0x8] sm:$0xff]  ;;  %s500_s6 = sshll.u32 %s217_s17, 3  ;;  %v372_v29 = vld [vmem:[%s908_s3 + $0xf8] sm:$0xff] }
  0x16   : > { %252 = vmatpush.msra.mxu0 %v225_v2  ;;  %272 = vmatpush.msra.mxu1 %v226_v3  ;;  %s219_s9 = scalar_lea.vmem %s905_s0, %s500_s6  ;;  %v229_v9 = vld [vmem:[%s907_s2] sm:$0x3]  ;;  %v356_v30 = vld [vmem:[%s908_s3 + $0x78] sm:$0xff]  ;;  %v371_v31 = vld [vmem:[%s908_s3 + $0xf0] sm:$0xff]  ;;  %s435_s6 = sshll.u32 %s431_s25, 4  ;;  %s436_s6 = int_to_ptr.hbm [resolvable:$true] %s435_s6 }
  0x17   : > { %v730_v8 = vld [vmem:[%s219_s9] sm:$0xff]  ;;  %v231_v10 = vperm.slane %v229_v9, 0  ;;  %v232_v11 = vperm.slane %v229_v9, 1  ;;  %373 = vmatpush.msra.mxu2 %v372_v29  ;;  %393 = vmatpush.msra.mxu3 %v356_v30  ;;  %v355_v32 = vld [vmem:[%s908_s3 + $0x70] sm:$0xff]  ;;  %v370_v33 = vld [vmem:[%s908_s3 + $0xe8] sm:$0xff]  ;;  %s573_s7 = sshra.s32 %s436_s6, 4  ;;  %s574_s7 = int_to_ptr.hbm [resolvable:$true] %s573_s7 }
  0x18   : > { %253 = vmatpush.msra.mxu0 %v223_v4  ;;  %273 = vmatpush.msra.mxu1 %v224_v5  ;;  %v354_v34 = vld [vmem:[%s908_s3 + $0x68] sm:$0xff]  ;;  %v369_v35 = vld [vmem:[%s908_s3 + $0xe0] sm:$0xff]  ;;  %v368_v37 = vld [vmem:[%s908_s3 + $0xd8] sm:$0xff]  ;;  %s575_s8 = scalar_lea.hbm %s574_s7, 8  ;;  %p580_p0 = scmp.lt.s32.totalorder %s574_s7, %s910_s5 }
  0x19   : > { %374 = vmatpush.msra.mxu2 %v371_v31  ;;  %394 = vmatpush.msra.mxu3 %v355_v32  ;;  %v353_v36 = vld [vmem:[%s908_s3 + $0x60] sm:$0xff]  ;;  %v352_v38 = vld [vmem:[%s908_s3 + $0x58] sm:$0xff]  ;;  %v367_v39 = vld [vmem:[%s908_s3 + $0xd0] sm:$0xff]  ;;  %p576_p11 = scmp.ne.s32.totalorder %s574_s7, %s575_s8  ;;  %p581_p1 = scmp.lt.s32.totalorder %s579_s11, %s575_s8 }
  0x1a   : > { %254 = vmatpush.msra.mxu0 %v221_v6  ;;  %274 = vmatpush.msra.mxu1 %v222_v7  ;;  %v351_v40 = vld [vmem:[%s908_s3 + $0x50] sm:$0xff]  ;;  %v366_v41 = vld [vmem:[%s908_s3 + $0xc8] sm:$0xff]  ;;  %v365_v43 = vld [vmem:[%s908_s3 + $0xc0] sm:$0xff] }
  0x1b   : > { %501 = vmatmul.msk.f32.vlgmr.msra.gmra.mxu0 %vm235_vm0, %v730_v8  ;;  %502 = vmatmul.msk.f32.vlgmr.msra.gmra.mxu1 %vm235_vm0, %v730_v8  ;;  %v350_v42 = vld [vmem:[%s908_s3 + $0x48] sm:$0xff]  ;;  %v349_v44 = vld [vmem:[%s908_s3 + $0x40] sm:$0xff]  ;;  %v364_v45 = vld [vmem:[%s908_s3 + $0xb8] sm:$0xff]  ;;  %p577_p12 = pnand %p576_p11, %p691_p5  ;;  %p582_p2 = por %p581_p1, %p580_p0 }
  0x1c   : > { %375 = vmatpush.msra.mxu2 %v370_v33  ;;  %395 = vmatpush.msra.mxu3 %v354_v34  ;;  %v348_v46 = vld [vmem:[%s908_s3 + $0x38] sm:$0xff]  ;;  %v363_v47 = vld [vmem:[%s908_s3 + $0xb0] sm:$0xff]  ;;  %v362_v49 = vld [vmem:[%s908_s3 + $0xa8] sm:$0xff] }
  0x1d   : > { %v347_v48 = vld [vmem:[%s908_s3 + $0x30] sm:$0xff]  ;;  %v346_v50 = vld [vmem:[%s908_s3 + $0x28] sm:$0xff]  ;;  %v361_v51 = vld [vmem:[%s908_s3 + $0xa0] sm:$0xff]  ;;  %p578_p13 = pneg %p577_p12 }
  0x1e   : > { %376 = vmatpush.msra.mxu2 %v369_v35  ;;  %396 = vmatpush.msra.mxu3 %v353_v36  ;;  %v345_v52 = vld [vmem:[%s908_s3 + $0x20] sm:$0xff]  ;;  %v360_v54 = vld [vmem:[%s908_s3 + $0x98] sm:$0xff]  ;;  %v359_v57 = vld [vmem:[%s908_s3 + $0x90] sm:$0xff] }
  0x1f   : > { %v344_v55 = vld [vmem:[%s908_s3 + $0x18] sm:$0xff]  ;;  %v343_v58 = vld [vmem:[%s908_s3 + $0x10] sm:$0xff]  ;;  %v358_v60 = vld [vmem:[%s908_s3 + $0x88] sm:$0xff]  ;;  %p583_p3 = pnand %p582_p2, %p578_p13 }
  0x20   : > { %377 = vmatpush.msra.mxu2 %v368_v37  ;;  %397 = vmatpush.msra.mxu3 %v352_v38  ;;  %v342_v61 = vld [vmem:[%s908_s3 + $0x8] sm:$0xff]  ;;  %v357_v63 = vld [vmem:[%s908_s3 + $0x80] sm:$0xff] }
  0x21   : > { %v341_v0 = vld [vmem:[%s908_s3] sm:$0xff] }
  0x22   : > { %378 = vmatpush.msra.mxu2 %v367_v39  ;;  %398 = vmatpush.msra.mxu3 %v351_v40 }
  0x24   : > { %379 = vmatpush.msra.mxu2 %v366_v41  ;;  %399 = vmatpush.msra.mxu3 %v350_v42 }
  0x26   : > { %380 = vmatpush.msra.mxu2 %v365_v43  ;;  %400 = vmatpush.msra.mxu3 %v349_v44 }
  0x28   : > { %381 = vmatpush.msra.mxu2 %v364_v45  ;;  %401 = vmatpush.msra.mxu3 %v348_v46 }
  0x2a   : > { %382 = vmatpush.msra.mxu2 %v363_v47  ;;  %402 = vmatpush.msra.mxu3 %v347_v48 }
  0x2c   : > { %383 = vmatpush.msra.mxu2 %v362_v49  ;;  %403 = vmatpush.msra.mxu3 %v346_v50 }
  0x2e   : > { %384 = vmatpush.msra.mxu2 %v361_v51  ;;  %404 = vmatpush.msra.mxu3 %v345_v52 }
  0x30   : > { %385 = vmatpush.msra.mxu2 %v360_v54  ;;  %405 = vmatpush.msra.mxu3 %v344_v55 }
  0x32   : > { %386 = vmatpush.msra.mxu2 %v359_v57  ;;  %406 = vmatpush.msra.mxu3 %v343_v58 }
  0x34   : > { %387 = vmatpush.msra.mxu2 %v358_v60  ;;  %407 = vmatpush.msra.mxu3 %v342_v61 }
  0x36   : > { %388 = vmatpush.msra.mxu2 %v357_v63  ;;  %408 = vmatpush.msra.mxu3 %v341_v0 }
  0x98   : > { %v256_v12 = vpop.f32.mrf.mxu0  ;;  %v276_v13 = vpop.f32.mrf.mxu1 }
  0x99   : > { %v739_v14 = vadd.f32 %v256_v12, %v231_v10  ;;  %v741_v15 = vadd.f32 %v276_v13, %v232_v11 }
  0x9b   : > { %v279_v16 = vmax.f32 %v739_v14, %v741_v15 }
  0x9d   : > { %280 = vmax.xlane.f32.xlu0 %v279_v16 }
 0x110   : > { %v745_v17 = vpop.xlane.xlu0 %280 }
 0x111   : > { %vm282_vm1 = vcmp.ge.f32.partialorder %v739_v14, %v745_v17  ;;  %vm284_vm2 = vcmp.ge.f32.partialorder %v741_v15, %v745_v17  ;;  %v336_v11 = vsub.f32 %v741_v15, %v745_v17  ;;  %v330_v12 = vsub.f32 %v739_v14, %v745_v17 }
 0x112   : > { %v283_v18 = vsel %vm282_vm1, -1e+30, %v739_v14  ;;  %v285_v19 = vsel %vm284_vm2, -1e+30, %v741_v15 }
 0x113   : > { %v286_v20 = vmax.f32 %v283_v18, %v285_v19  ;;  %v337_v13 = vmul.f32 1.442695, %v336_v11  ;;  %v331_v16 = vmul.f32 1.442695, %v330_v12 }
 0x115   : > { %287 = vmax.xlane.f32.xlu0 %v286_v20 }
 0x188   : > { %v753_v21 = vpop.xlane.xlu0 %287 }
 0x189   : > { %vm293_vm3 = vcmp.ge.f32.partialorder %v283_v18, %v753_v21  ;;  %vm295_vm4 = vcmp.ge.f32.partialorder %v285_v19, %v753_v21  ;;  %v289_v53 = vsub.f32 %v753_v21, %v745_v17 }
 0x18a   : > { %v294_v22 = vsel %vm293_vm3, -1e+30, %v283_v18  ;;  %v296_v23 = vsel %vm295_vm4, -1e+30, %v285_v19 }
 0x18b   : > { %v297_v24 = vmax.f32 %v294_v22, %v296_v23  ;;  %v290_v59 = vmul.f32 1.442695, %v289_v53 }
 0x18d   : > { %298 = vmax.xlane.f32.xlu1 %v297_v24  ;;  %547 = vpow2.f32 %v290_v59 }
 0x193   : > { %v548_v4 = vpop.eup %547 }
 0x194   : > { %v292_v6 = vadd.f32 1.0, %v548_v4 }
 0x200   : > { %v757_v25 = vpop.xlane.xlu1 %298 }
 0x201   : > { %vm304_vm5 = vcmp.ge.f32.partialorder %v294_v22, %v757_v25  ;;  %vm306_vm6 = vcmp.ge.f32.partialorder %v296_v23, %v757_v25  ;;  %v300_v56 = vsub.f32 %v757_v25, %v745_v17 }
 0x202   : > { %v305_v26 = vsel %vm304_vm5, -1e+30, %v294_v22  ;;  %v307_v27 = vsel %vm306_vm6, -1e+30, %v296_v23 }
 0x203   : > { %v308_v28 = vmax.f32 %v305_v26, %v307_v27  ;;  %v301_v62 = vmul.f32 1.442695, %v300_v56 }
 0x205   : > { %309 = vmax.xlane.f32.xlu1 %v308_v28  ;;  %549 = vpow2.f32 %v301_v62 }
 0x20b   : > { %v550_v5 = vpop.eup %549 }
 0x20c   : > { %v303_v7 = vadd.f32 %v550_v5, %v292_v6 }
 0x278   : > { %v310_v1 = vpop.xlane.xlu1 %309 }
 0x279   : > { %v311_v2 = vsub.f32 %v310_v1, %v745_v17  ;;  %vm329_vm8 = vcmp.ge.f32.partialorder %v739_v14, %v310_v1  ;;  %vm335_vm9 = vcmp.ge.f32.partialorder %v741_v15, %v310_v1  ;;  %v546_v14 = vld [vmem:[%s909_s4] ss:$0 sm:$0xff] }
 0x27b   : > { %v312_v3 = vmul.f32 1.442695, %v311_v2 }
 0x27d   : > { %551 = vpow2.f32 %v312_v3 }
 0x283   : > { %v552_v9 = vpop.eup %551 }
 0x284   : > { %v314_v10 = vadd.f32 %v552_v9, %v303_v7 }
 0x286   : > { %553 = vrcp.f32 %v314_v10  ;;  %v326_v21 = vand.u32 2147483648, %v314_v10  ;;  %v324_v23 = vand.u32 2147483647, %v314_v10  ;;  %vm320_vm10 = vweird.f32 %v314_v10 }
 0x287   : > { %555 = vpow2.f32 %v337_v13 }
 0x288   : > { %557 = vpow2.f32 %v331_v16  ;;  %v327_v25 = vor.u32 1.1754944e-38, %v326_v21  ;;  %vm325_vm12 = vcmp.eq.f32.partialorder %v324_v23, 8.507059e+37 }
 0x28c   : > { %v554_v18 = vpop.eup %553 }
 0x28d   : > { %v316_v19 = vmul.f32 %v554_v18, %v314_v10  ;;  %vm321_vm7 = vweird.f32 %v554_v18  ;;  %v556_v17 = vpop.eup %555 }
 0x28e   : > { %vm322_vm11 = vmor %vm320_vm10, %vm321_vm7  ;;  %v558_v26 = vpop.eup %557  ;;  %v339_v29 = vsel %vm335_vm9, %v556_v17, 0.0 }
 0x28f   : > { %v317_v20 = vsub.f32 1.0, %v316_v19  ;;  %v333_v30 = vsel %vm329_vm8, %v558_v26, 0.0 }
 0x291   : > { %v318_v22 = vmul.f32 %v554_v18, %v317_v20 }
 0x293   : > { %v319_v24 = vadd.f32 %v554_v18, %v318_v22 }
 0x295   : > { %v323_v27 = vsel %vm322_vm11, %v554_v18, %v319_v24 }
 0x296   : > { %v328_v28 = vsel %vm325_vm12, %v327_v25, %v323_v27 }
 0x297   : > { %v340_v31 = vmul.f32 %v339_v29, %v328_v28  ;;  %v334_v32 = vmul.f32 %v333_v30, %v328_v28 }
 0x299   : > { %389 = vmatmul.f32.vlgmr.msra.gmra.mxu2 %v340_v31  ;;  %409 = vmatmul.f32.vlgmr.msra.gmra.mxu3 %v334_v32 }
 0x31c   : > { %v390_v15 = vpop.f32.mrf.mxu2  ;;  %v410_v33 = vpop.f32.mrf.mxu3 }
 0x31d   : > { %v411_v34 = vadd.f32 %v410_v33, %v390_v15 }
 0x31f   : > { %v417_v35 = vadd.f32 %v546_v14, %v411_v34 }
 0x321   : > { %v418_v36 = vadd.f32 %v417_v35, %v730_v8 }
 0x323   : > { %419 = vst.msk [vmem:[%s215_s26] sm:$0xff] %vm235_vm0, %v418_v36 }
 0x324   : > { %586 = shalt.err (!%p583_p3)
}
 0x325   : > { %507 = dma.vmem_to_hbm [thread:$0]  (%p691_p5), %s434_s30, 128, %s436_s6, %s421_s22  }
 0x326 PF: > { %p513_p4 = scmp.ge.s32.totalorder %s621_s21, 2  ;;  %s447_s12 = sand.u32 1, %s609_s18  }
 0x327   : > { %s448_s15 = scalar_lea.sflag [#allocation3], %s447_s12 }
 0x328   : > { %p510_p7 = pnand %p513_p4, %p695_p6 }
 0x32a   : > { %p511_p8 = pneg %p510_p7 }
 0x32c   : > { %604 = dma.done.wait (%p511_p8), %s448_s15, 128  }
 0x32d   : > { %606 = vsyncadd (%p511_p8), %s448_s15, 4294967168  ;;  %p15_p9 = scmp.ge.s32.totalorder %s678_s24, 4   ;;  %s913_s18 = smov %s613_s19 }
 0x32e   : > { %s914_s19 = smov %s617_s20  ;;  %s915_s20 = smov %s689_s27 }
 0x32f   : > { %s916_s21 = smov %s678_s24  ;;  %17 = sbr.rel (!%p15_p9) target bundleno = 3 (0x3), region = 75 }
 0x334   :  { %454 = vsyncpa [#allocation3], 1 }
 0x335   :  { %456 = vsyncpa [#allocation3 + $0x1], 1 }

</bundles_post_ra>
